<compile_context>
chip_gen: v7x
topology: tpu7x:2x2x1
jax: 0.10.0
libtpu: 0.0.40
codegen_flags: <defaults>
</compile_context>

<pallas_src>
import functools

import jax
import jax.numpy as jnp
from jax import lax
from jax.experimental import pallas as pl
from jax.experimental.pallas import tpu as pltpu

_LANES = 128


def _tree_reduce(vals, op):
    """Pairwise tree-reduce a Python list of same-shape arrays with `op`."""
    while len(vals) > 1:
        nxt = []
        for i in range(0, len(vals) - 1, 2):
            nxt.append(op(vals[i], vals[i + 1]))
        if len(vals) % 2:
            nxt.append(vals[-1])
        vals = nxt
    return vals[0]


def _channel_attention_kernel(x_ref, w1_ref, w2_ref, o_ref, sum_acc, max_acc,
                              *, hw, tile_hw, bb):
    # x_ref:   (bb, C, tile_hw)  current spatial tile of bb batch elements
    # w1_ref:  (Cr, C)           1x1 conv weight  C -> Cr (bias-free)
    # w2_ref:  (C, Cr)           1x1 conv weight  Cr -> C (bias-free)
    # o_ref:   (bb, 1, C)        lane-dense sigmoid output
    # sum_acc: (bb, C, 128)      f32 running 128-lane partial sums
    # max_acc: (bb, C, 128)      f32 running 128-lane partial maxima
    k = pl.program_id(1)
    nk = pl.num_programs(1)

    @pl.when(k == 0)
    def _init():
        sum_acc[...] = jnp.zeros_like(sum_acc)
        max_acc[...] = jnp.full_like(max_acc, -jnp.inf)

    def _accumulate(valid_lanes):
        # valid_lanes is a static Python int: tile_hw for full tiles,
        # hw % tile_hw for the single ragged last tile.
        n_valid = -(-valid_lanes // _LANES)   # fully-invalid chunks are skipped
        sums, maxs = [], []
        for c in range(n_valid):
            chunk = x_ref[:, :, pl.ds(c * _LANES, _LANES)].astype(jnp.float32)
            in_chunk = min(_LANES, valid_lanes - c * _LANES)
            if in_chunk < _LANES:
                # Only the single partial chunk pays the mask (select, not
                # multiply — out-of-bounds lanes may hold arbitrary garbage).
                lane = lax.broadcasted_iota(jnp.int32, chunk.shape, 2)
                ok = lane < in_chunk
                sums.append(jnp.where(ok, chunk, 0.0))
                maxs.append(jnp.where(ok, chunk, -jnp.inf))
            else:
                sums.append(chunk)
                maxs.append(chunk)
        # In-vreg tree reduce (pure VPU; 128-lane slices are vreg-aligned).
        sum_acc[...] += _tree_reduce(sums, lambda a, b: a + b)
        max_acc[...] = jnp.maximum(max_acc[...], _tree_reduce(maxs, jnp.maximum))

    rem = hw % tile_hw
    if rem == 0:
        _accumulate(tile_hw)          # every tile full: no masking anywhere
    else:
        @pl.when(k < nk - 1)
        def _full_tile():
            _accumulate(tile_hw)

        @pl.when(k == nk - 1)
        def _ragged_tile():
            _accumulate(rem)          # only the last tile is masked

    @pl.when(k == nk - 1)
    def _finalize():
        # One small cross-lane reduction per batch-block (128 lanes only).
        avg = jnp.sum(sum_acc[...], axis=-1) * (1.0 / hw)     # (bb, C)
        mx = jnp.max(max_acc[...], axis=-1)                   # (bb, C)

        # Fused shared MLP for both pooled vectors (single MXU pass each).
        v = jnp.concatenate([avg, mx], axis=0)                # (2*bb, C)
        h = lax.dot_general(v, w1_ref[...], (((1,), (1,)), ((), ())),
                            preferred_element_type=jnp.float32)   # (2*bb, Cr)
        h = jnp.maximum(h, 0.0)
        y = lax.dot_general(h, w2_ref[...], (((1,), (1,)), ((), ())),
                            preferred_element_type=jnp.float32)   # (2*bb, C)

        out = jax.nn.sigmoid(y[:bb] + y[bb:])                 # (bb, C)
        o_ref[...] = out.reshape(bb, 1, -1).astype(o_ref.dtype)


def _round_up(a, m):
    return (a + m - 1) // m * m


def _tpu_vmem_and_cores():
    """Best-effort (per-core VMEM capacity bytes, is_multi_tensorcore_chip)."""
    vmem_cap = None
    kind = ""
    try:
        kind = jax.devices()[0].device_kind.lower()
    except Exception:
        pass
    try:
        info = pltpu.get_tpu_info()
        for attr in ("vmem_capacity_bytes", "vmem_bytes", "vmem_size_bytes"):
            val = getattr(info, attr, None)
            if val:
                vmem_cap = int(val)
                break
    except Exception:
        pass
    multi_tc = ("v7" in kind) or ("7x" in kind)
    if vmem_cap is None:
        vmem_cap = (64 if multi_tc else 128) * 1024 * 1024
    # 64 MiB-per-core class chips are the 2-TC generation.
    if vmem_cap <= 80 * 1024 * 1024 and ("v5" not in kind) and ("v6" not in kind):
        multi_tc = True
    return vmem_cap, multi_tc


def channel_attention(x, w1, w2, *, tile_hw=None, vmem_budget_bytes=None):
    """x: (B, C, H, W); w1: (C//r, C); w2: (C, C//r). Returns (B, C, 1, 1) f32."""
    B, C, H, W = x.shape
    Cr = w1.shape[0]
    HW = H * W
    x_flat = x.reshape(B, C, HW)

    vmem_cap, multi_tc = _tpu_vmem_and_cores()

    if vmem_budget_bytes is None:
        if multi_tc:
            # v7x: 64 MiB per TC; keep double-buffered input + scratch modest.
            vmem_budget_bytes = min(vmem_cap // 2, 28 * 1024 * 1024)
        else:
            # v5e/v6e: 128 MiB physical; bigger streaming blocks are ~free.
            vmem_budget_bytes = min(vmem_cap // 2, 56 * 1024 * 1024)

    in_item = jnp.dtype(x_flat.dtype).itemsize
    w_item = jnp.dtype(w1.dtype).itemsize

    def usage(bb_, thw_):
        in_bytes = 2 * bb_ * C * thw_ * in_item        # double-buffered input tile
        acc_bytes = 2 * bb_ * C * _LANES * 4           # 128-wide f32 sum/max scratch
        w_bytes = 2 * 2 * Cr * C * w_item              # (tiny) weights, double-buffered
        out_bytes = 2 * bb_ * C * 4                    # (tiny) output block
        return in_bytes + acc_bytes + w_bytes + out_bytes

    # Keep >= 2 steps on the "parallel" batch axis only on 2-TC chips (v7x);
    # on single-TC v5e/v6e larger bb just removes per-step overhead.
    bb_cap = max(1, B // 2) if (multi_tc and B > 1) else B
    divisors = [d for d in range(bb_cap, 0, -1) if B % d == 0]

    hw_padded = _round_up(HW, _LANES)
    max_tile = min(hw_padded, 4096 if multi_tc else 2048)
    if tile_hw is None:
        tile_hw = max_tile
    else:
        tile_hw = min(_round_up(tile_hw, _LANES), hw_padded)

    # Block-size search: prefer the largest bb that fits; if even bb=1 is over
    # budget, back off tile_hw (halve toward 128) instead of over-allocating.
    bb = None
    while True:
        for cand in divisors:
            if usage(cand, tile_hw) <= vmem_budget_bytes:
                bb = cand
                break
        if bb is not None or tile_hw <= _LANES:
            break
        tile_hw = max(_LANES, _round_up(tile_hw // 2, _LANES))
    if bb is None:
        bb = 1  # minimum feasible config; vmem_limit below gets extra headroom

    n_hw = pl.cdiv(HW, tile_hw)

    vmem_limit = int(min(
        vmem_cap,
        max(usage(bb, tile_hw) + (4 << 20),
            (48 if multi_tc else 96) * 1024 * 1024)))

    kernel = functools.partial(_channel_attention_kernel,
                               hw=HW, tile_hw=tile_hw, bb=bb)

    out = pl.pallas_call(
        kernel,
        out_shape=jax.ShapeDtypeStruct((B, 1, C), jnp.float32),
        grid_spec=pltpu.PrefetchScalarGridSpec(
            num_scalar_prefetch=0,
            grid=(B // bb, n_hw),
            in_specs=[
                pl.BlockSpec((bb, C, tile_hw), lambda b, k: (b, 0, k)),
                pl.BlockSpec((Cr, C), lambda b, k: (0, 0)),
                pl.BlockSpec((C, Cr), lambda b, k: (0, 0)),
            ],
            out_specs=pl.BlockSpec((bb, 1, C), lambda b, k: (b, 0, 0)),
            scratch_shapes=[
                pltpu.VMEM((bb, C, _LANES), jnp.float32),  # running 128-lane sum
                pltpu.VMEM((bb, C, _LANES), jnp.float32),  # running 128-lane max
            ],
        ),
        compiler_params=pltpu.CompilerParams(
            dimension_semantics=("parallel", "arbitrary"),
            vmem_limit_bytes=vmem_limit,
        ),
    )(x_flat, w1, w2)

    return out.reshape(B, C, 1, 1)


def channel_attention_ref(x, w1, w2):
    """Pure-JAX reference matching the PyTorch forward semantics."""
    xf = x.astype(jnp.float32)
    avg = jnp.mean(xf, axis=(2, 3))          # (B, C)
    mx = jnp.max(xf, axis=(2, 3))            # (B, C)

    def mlp(v):                               # v: (B, C)
        h = jnp.maximum(v @ w1.T, 0.0)        # (B, Cr)
        return h @ w2.T                       # (B, C)

    out = jax.nn.sigmoid(mlp(avg) + mlp(mx))
    return out[:, :, None, None]


if __name__ == "__main__":
    # Shapes consistent with the module (in_channels divisible by r=16).
    B, C, H, W = 2, 64, 16, 16
    reduction_ratio = 16
    Cr = C // reduction_ratio

    key = jax.random.PRNGKey(0)
    kx, k1, k2 = jax.random.split(key, 3)

    x = jax.random.normal(kx, (B, C, H, W), dtype=jnp.float32)
    # Bias-free 1x1 conv weights (PyTorch shapes (Cr,C,1,1)/(C,Cr,1,1), squeezed).
    w1 = jax.random.normal(k1, (Cr, C), dtype=jnp.float32) * (1.0 / jnp.sqrt(C))
    w2 = jax.random.normal(k2, (C, Cr), dtype=jnp.float32) * (1.0 / jnp.sqrt(Cr))

    out = jax.block_until_ready(channel_attention(x, w1, w2))
    ref = channel_attention_ref(x, w1, w2)
    assert out.shape == (B, C, 1, 1), out.shape
    assert jnp.allclose(out, ref, atol=1e-5, rtol=1e-5), "f32 mismatch vs reference"

    # bf16 activations (halves HBM bytes read); accumulation stays f32 in-kernel.
    x_bf16 = x.astype(jnp.bfloat16)
    out_bf16 = jax.block_until_ready(channel_attention(x_bf16, w1, w2))
    ref_bf16 = channel_attention_ref(x_bf16, w1, w2)
    assert jnp.allclose(out_bf16, ref_bf16, atol=1e-4, rtol=1e-4), "bf16 mismatch"

    # Non-divisible spatial size with a forced small tile exercises both the
    # unmasked full-tile branch and the masked ragged last tile
    # (HW = 24*24 = 576, tile_hw=256 -> 2 full tiles + one 64-lane partial).
    C2, Cr2 = 32, 2
    kx2, k12, k22 = jax.random.split(jax.random.PRNGKey(1), 3)
    x2 = jax.random.normal(kx2, (2, C2, 24, 24), dtype=jnp.float32)
    w12 = jax.random.normal(k12, (Cr2, C2), dtype=jnp.float32) * (1.0 / jnp.sqrt(C2))
    w22 = jax.random.normal(k22, (C2, Cr2), dtype=jnp.float32) * (1.0 / jnp.sqrt(Cr2))
    out2 = jax.block_until_ready(channel_attention(x2, w12, w22, tile_hw=256))
    ref2 = channel_attention_ref(x2, w12, w22)
    assert jnp.allclose(out2, ref2, atol=1e-5, rtol=1e-5), "masked-tile mismatch"

    print("KERNEL_OK")
</pallas_src>

<mosaic_0001>
module attributes {stable_mosaic.version = 11 : i64} {
  func.func @_channel_attention_kernel(%arg0: i32, %arg1: i32, %arg2: memref<2x64x256xf32, #tpu.memory_space<vmem>>, %arg3: memref<4x64xf32, #tpu.memory_space<vmem>>, %arg4: memref<64x4xf32, #tpu.memory_space<vmem>>, %arg5: memref<2x1x64xf32, #tpu.memory_space<vmem>>, %arg6: memref<2x64x128xf32, #tpu.memory_space<vmem>>, %arg7: memref<2x64x128xf32, #tpu.memory_space<vmem>>) attributes {dimension_semantics = [#tpu.dimension_semantics<parallel>, #tpu.dimension_semantics<arbitrary>], iteration_bounds = array<i64: 1, 1>, scalar_prefetch = 0 : i64, scratch_operands = 2 : i64, tpu.core_type = #tpu.core_type<tc>, window_params = [{transform_indices = @transform_0, window_bounds = array<i64: 2, 64, 256>}, {pipeline_mode = #tpu.pipeline_mode<synchronous>, transform_indices = @transform_1, window_bounds = array<i64: 4, 64>}, {pipeline_mode = #tpu.pipeline_mode<synchronous>, transform_indices = @transform_2, window_bounds = array<i64: 64, 4>}, {transform_indices = @transform_3, window_bounds = array<i64: 2, 1, 64>}]} {
    %c0_i32 = arith.constant 0 : i32
    %0 = arith.cmpi eq, %arg1, %c0_i32 : i32
    %1 = arith.extui %0 : i1 to i32
    %c0_i32_0 = arith.constant 0 : i32
    %2 = arith.cmpi ne, %1, %c0_i32_0 : i32
    scf.if %2 {
      %cst = arith.constant 0.000000e+00 : f32
      %16 = vector.broadcast %cst : f32 to vector<2x64x128xf32>
      %c0_19 = arith.constant 0 : index
      %c0_20 = arith.constant 0 : index
      %c0_21 = arith.constant 0 : index
      %17 = vector.load %arg6[%c0_19, %c0_20, %c0_21] : memref<2x64x128xf32, #tpu.memory_space<vmem>>, vector<2x64x128xf32>
      tpu.vector_store %arg6[%c0_19, %c0_20, %c0_21], %16 {strides = array<i32>} : memref<2x64x128xf32, #tpu.memory_space<vmem>>, vector<2x64x128xf32>,
      %cst_22 = arith.constant 0xFF800000 : f32
      %18 = vector.broadcast %cst_22 : f32 to vector<2x64x128xf32>
      %c0_23 = arith.constant 0 : index
      %c0_24 = arith.constant 0 : index
      %c0_25 = arith.constant 0 : index
      %19 = vector.load %arg7[%c0_23, %c0_24, %c0_25] : memref<2x64x128xf32, #tpu.memory_space<vmem>>, vector<2x64x128xf32>
      tpu.vector_store %arg7[%c0_23, %c0_24, %c0_25], %18 {strides = array<i32>} : memref<2x64x128xf32, #tpu.memory_space<vmem>>, vector<2x64x128xf32>,
    } else {
    }
    %c0 = arith.constant 0 : index
    %c0_1 = arith.constant 0 : index
    %c0_2 = arith.constant 0 : index
    %3 = vector.load %arg2[%c0, %c0_1, %c0_2] : memref<2x64x256xf32, #tpu.memory_space<vmem>>, vector<2x64x128xf32>
    %c0_3 = arith.constant 0 : index
    %c0_4 = arith.constant 0 : index
    %c128 = arith.constant 128 : index
    %4 = vector.load %arg2[%c0_3, %c0_4, %c128] : memref<2x64x256xf32, #tpu.memory_space<vmem>>, vector<2x64x128xf32>
    %c0_5 = arith.constant 0 : index
    %c0_6 = arith.constant 0 : index
    %c0_7 = arith.constant 0 : index
    %5 = vector.load %arg6[%c0_5, %c0_6, %c0_7] : memref<2x64x128xf32, #tpu.memory_space<vmem>>, vector<2x64x128xf32>
    %6 = arith.addf %3, %4 : vector<2x64x128xf32>
    %7 = arith.addf %5, %6 : vector<2x64x128xf32>
    %c0_8 = arith.constant 0 : index
    %c0_9 = arith.constant 0 : index
    %c0_10 = arith.constant 0 : index
    %8 = vector.load %arg6[%c0_8, %c0_9, %c0_10] : memref<2x64x128xf32, #tpu.memory_space<vmem>>, vector<2x64x128xf32>
    tpu.vector_store %arg6[%c0_8, %c0_9, %c0_10], %7 {strides = array<i32>} : memref<2x64x128xf32, #tpu.memory_space<vmem>>, vector<2x64x128xf32>,
    %c0_11 = arith.constant 0 : index
    %c0_12 = arith.constant 0 : index
    %c0_13 = arith.constant 0 : index
    %9 = vector.load %arg7[%c0_11, %c0_12, %c0_13] : memref<2x64x128xf32, #tpu.memory_space<vmem>>, vector<2x64x128xf32>
    %10 = arith.maximumf %3, %4 : vector<2x64x128xf32>
    %11 = arith.maximumf %9, %10 : vector<2x64x128xf32>
    %c0_14 = arith.constant 0 : index
    %c0_15 = arith.constant 0 : index
    %c0_16 = arith.constant 0 : index
    %12 = vector.load %arg7[%c0_14, %c0_15, %c0_16] : memref<2x64x128xf32, #tpu.memory_space<vmem>>, vector<2x64x128xf32>
    tpu.vector_store %arg7[%c0_14, %c0_15, %c0_16], %11 {strides = array<i32>} : memref<2x64x128xf32, #tpu.memory_space<vmem>>, vector<2x64x128xf32>,
    %c0_i32_17 = arith.constant 0 : i32
    %13 = arith.cmpi eq, %arg1, %c0_i32_17 : i32
    %14 = arith.extui %13 : i1 to i32
    %c0_i32_18 = arith.constant 0 : i32
    %15 = arith.cmpi ne, %14, %c0_i32_18 : i32
    scf.if %15 {
      %c0_19 = arith.constant 0 : index
      %c0_20 = arith.constant 0 : index
      %c0_21 = arith.constant 0 : index
      %16 = vector.load %arg6[%c0_19, %c0_20, %c0_21] : memref<2x64x128xf32, #tpu.memory_space<vmem>>, vector<2x64x128xf32>
      %cst = arith.constant dense<0.000000e+00> : vector<2x64xf32>
      %17 = vector.multi_reduction <add>, %16, %cst [2] : vector<2x64x128xf32> to vector<2x64xf32>
      %cst_22 = arith.constant 3.906250e-03 : f32
      %18 = vector.broadcast %cst_22 : f32 to vector<2x64xf32>
      %19 = arith.mulf %17, %18 : vector<2x64xf32>
      %c0_23 = arith.constant 0 : index
      %c0_24 = arith.constant 0 : index
      %c0_25 = arith.constant 0 : index
      %20 = vector.load %arg7[%c0_23, %c0_24, %c0_25] : memref<2x64x128xf32, #tpu.memory_space<vmem>>, vector<2x64x128xf32>
      %cst_26 = arith.constant dense<0xFF800000> : vector<2x64xf32>
      %21 = vector.multi_reduction <maximumf>, %20, %cst_26 [2] : vector<2x64x128xf32> to vector<2x64xf32>
      %22 = tpu.concatenate %19, %21 in 0 : vector<2x64xf32>, vector<2x64xf32> -> vector<4x64xf32>
      %c0_27 = arith.constant 0 : index
      %c0_28 = arith.constant 0 : index
      %23 = vector.load %arg3[%c0_27, %c0_28] : memref<4x64xf32, #tpu.memory_space<vmem>>, vector<4x64xf32>
      %cst_29 = arith.constant dense<0.000000e+00> : vector<4x4xf32>
      %24 = tpu.matmul %22, %23, %cst_29 {dimension_numbers = #tpu.dot_dimension_numbers<[1], [1], [0], [0], [0, 0, 1, 0], [], []>} : vector<4x64xf32>, vector<4x64xf32>, vector<4x4xf32> -> vector<4x4xf32>
      %cst_30 = arith.constant 0.000000e+00 : f32
      %25 = vector.broadcast %cst_30 : f32 to vector<4x4xf32>
      %26 = arith.maximumf %24, %25 : vector<4x4xf32>
      %c0_31 = arith.constant 0 : index
      %c0_32 = arith.constant 0 : index
      %27 = vector.load %arg4[%c0_31, %c0_32] : memref<64x4xf32, #tpu.memory_space<vmem>>, vector<64x4xf32>
      %cst_33 = arith.constant dense<0.000000e+00> : vector<4x64xf32>
      %28 = tpu.matmul %26, %27, %cst_33 {dimension_numbers = #tpu.dot_dimension_numbers<[1], [1], [0], [0], [0, 0, 1, 0], [], []>} : vector<4x4xf32>, vector<64x4xf32>, vector<4x64xf32> -> vector<4x64xf32>
      %29 = vector.extract_strided_slice %28 {offsets = [0, 0], sizes = [2, 64], strides = [1, 1]} : vector<4x64xf32> to vector<2x64xf32>
      %30 = vector.extract_strided_slice %28 {offsets = [2, 0], sizes = [2, 64], strides = [1, 1]} : vector<4x64xf32> to vector<2x64xf32>
      %31 = arith.addf %29, %30 : vector<2x64xf32>
      %32 = arith.negf %31 : vector<2x64xf32>
      %33 = math.exp %32 : vector<2x64xf32>
      %cst_34 = arith.constant 1.000000e+00 : f32
      %34 = vector.broadcast %cst_34 : f32 to vector<2x64xf32>
      %35 = arith.addf %34, %33 : vector<2x64xf32>
      %36 = arith.divf %34, %35 : vector<2x64xf32>
      %37 = vector.shape_cast %36 : vector<2x64xf32> to vector<2x1x64xf32>
      %c0_35 = arith.constant 0 : index
      %c0_36 = arith.constant 0 : index
      %c0_37 = arith.constant 0 : index
      %38 = vector.load %arg5[%c0_35, %c0_36, %c0_37] : memref<2x1x64xf32, #tpu.memory_space<vmem>>, vector<2x1x64xf32>
      tpu.vector_store %arg5[%c0_35, %c0_36, %c0_37], %37 {strides = array<i32>} : memref<2x1x64xf32, #tpu.memory_space<vmem>>, vector<2x1x64xf32>,
    } else {
    }
    return
  }
  func.func @transform_0(%arg0: i32, %arg1: i32) -> (i32, i32, i32) {
    %c0_i32 = arith.constant 0 : i32
    %c0_i32_0 = arith.constant 0 : i32
    return %arg0, %c0_i32, %arg1 : i32, i32, i32
  }
  func.func @transform_1(%arg0: i32, %arg1: i32) -> (i32, i32) {
    %c0_i32 = arith.constant 0 : i32
    %c0_i32_0 = arith.constant 0 : i32
    %c0_i32_1 = arith.constant 0 : i32
    return %c0_i32, %c0_i32_0 : i32, i32
  }
  func.func @transform_2(%arg0: i32, %arg1: i32) -> (i32, i32) {
    %c0_i32 = arith.constant 0 : i32
    %c0_i32_0 = arith.constant 0 : i32
    %c0_i32_1 = arith.constant 0 : i32
    return %c0_i32, %c0_i32_0 : i32, i32
  }
  func.func @transform_3(%arg0: i32, %arg1: i32) -> (i32, i32, i32) {
    %c0_i32 = arith.constant 0 : i32
    %c0_i32_0 = arith.constant 0 : i32
    %c0_i32_1 = arith.constant 0 : i32
    return %arg0, %c0_i32, %c0_i32_0 : i32, i32, i32
  }
}

</mosaic_0001>

<bundles_post_ra>
// kernel: tpu_custom_call.1
= control target key start
LH: loop header
LB: loop body
LE: loop exit
PB: predicated region body
PF: predicated region fallthrough
CT: control target
= control target key end

     0   :  { %8 = vsyncpa [#allocation5], 0  ;;  %s1219_s0 = inlined_call_operand.hbm [shape: f32[2,64,256], index: 0, kind: input, shape index: {}]   ;;  %s1220_s1 = inlined_call_operand.hbm [shape: f32[4,64], index: 1, kind: input, shape index: {}]   ;;  %s1221_s2 = inlined_call_operand.hbm [shape: f32[64,4], index: 2, kind: input, shape index: {}]   ;;  %s1222_s3 = inlined_call_operand.hbm [shape: f32[2,1,64], index: 3, kind: output, shape index: {}]  }
   0x1   :  { %9 = vsyncpa [#allocation8], 0 }
   0x2   :  { %10 = vsyncpa [#allocation6], 0  ;;  %s992_s12 = smov [#allocation7]   ;;  %s993_s14 = smov [#allocation4]  }
   0x3   :  { %s29_s13 = sshll.u32 %s992_s12, 4  ;;  %s16_s15 = sshll.u32 %s993_s14, 4  ;;  %s30_s13 = int_to_ptr.vmem [resolvable:$true] %s29_s13  ;;  %s1025_s15 = int_to_ptr.vmem [resolvable:$true] %s16_s15 }
   0x4   :  { %s898_s18 = scalar_lea.hbm %s1220_s1, 64 }
   0x5   :  { %p899_p0 = scmp.ne.s32.totalorder %s1220_s1, %s898_s18  ;;  %p902_p1 = scmp.lt.u32.totalorder %s898_s18, %s1220_s1 }
   0x7   :  { %p904_p2 = pnand %p902_p1, %p899_p0 }
   0x9   :  { %907 = shalt.err (!%p904_p2)
}
   0xa   :  { %s908_s23 = scalar_lea.vmem %s30_s13, 64  ;;  %p913_p4 = scmp.lt.s32.totalorder %s30_s13, %s30_s13 }
   0xb   :  { %p909_p3 = scmp.ne.s32.totalorder %s30_s13, %s908_s23  ;;  %p914_p5 = scmp.lt.s32.totalorder %s908_s23, %s908_s23 }
   0xd   :  { %p915_p6 = por %p914_p5, %p913_p4 }
   0xf   :  { %p916_p7 = pnand %p915_p6, %p909_p3 }
  0x11   :  { %919 = shalt.err (!%p916_p7)
}
  0x12   :  { %32 = dma.hbm_to_vmem [thread:$0]  %s1220_s1, 64, %s30_s13, [#allocation8]  }
  0x13   :  { %s920_s28 = scalar_lea.hbm %s1219_s0, 4096 }
  0x14   :  { %p921_p8 = scmp.ne.s32.totalorder %s1219_s0, %s920_s28  ;;  %p924_p9 = scmp.lt.u32.totalorder %s920_s28, %s1219_s0 }
  0x16   :  { %p926_p10 = pnand %p924_p9, %p921_p8 }
  0x18   :  { %929 = shalt.err (!%p926_p10)
}
  0x19   :  { %s930_s6 = scalar_lea.vmem %s1025_s15, 4096  ;;  %p935_p12 = scmp.lt.s32.totalorder %s1025_s15, %s1025_s15 }
  0x1a   :  { %p931_p11 = scmp.ne.s32.totalorder %s1025_s15, %s930_s6  ;;  %p936_p13 = scmp.lt.s32.totalorder %s930_s6, %s930_s6 }
  0x1c   :  { %p937_p0 = por %p936_p13, %p935_p12 }
  0x1e   :  { %p938_p1 = pnand %p937_p0, %p931_p11 }
  0x20   :  { %941 = shalt.err (!%p938_p1)
}
  0x21   :  { %s994_s1 = smov 256   ;;  %s995_s7 = smov 16  }
  0x22   :  { %22 = dma.hbm_to_vmem [thread:$0]  %s1219_s0, 4096, %s1025_s15, [#allocation5], %s994_s1, %s994_s1, %s995_s7  }
  0x23   :  { %s996_s10 = smov [#allocation9]   ;;  %s942_s14 = scalar_lea.hbm %s1221_s2, 1024 }
  0x24   :  { %s38_s11 = sshll.u32 %s996_s10, 4  ;;  %p943_p2 = scmp.ne.s32.totalorder %s1221_s2, %s942_s14  ;;  %s39_s11 = int_to_ptr.vmem [resolvable:$true] %s38_s11 }
  0x25   :  { %p946_p3 = scmp.lt.u32.totalorder %s942_s14, %s1221_s2 }
  0x27   :  { %p948_p4 = pnand %p946_p3, %p943_p2 }
  0x29   :  { %951 = shalt.err (!%p948_p4)
}
  0x2a   :  { %s952_s20 = scalar_lea.vmem %s39_s11, 1024  ;;  %p957_p6 = scmp.lt.s32.totalorder %s39_s11, %s39_s11 }
  0x2b   :  { %p953_p5 = scmp.ne.s32.totalorder %s39_s11, %s952_s20  ;;  %p958_p7 = scmp.lt.s32.totalorder %s952_s20, %s952_s20 }
  0x2d   :  { %p959_p8 = por %p958_p7, %p957_p6 }
  0x2f   :  { %p960_p9 = pnand %p959_p8, %p953_p5 }
  0x31   :  { %963 = shalt.err (!%p960_p9)
}
  0x32   :  { %s997_s0 = smov 128   ;;  %s998_s15 = smov 8  }
  0x33   :  { %44 = dma.hbm_to_vmem [thread:$0]  %s1221_s2, 1024, %s39_s11, [#allocation8], %s997_s0, %s997_s0, %s998_s15  }
  0x34   :  { %986 = dma.done.wait [#allocation5], 4096  }
  0x35   :  { %987 = vsyncadd [#allocation5], 4294963200 }
  0x36   :  { %988 = dma.done.wait [#allocation8], 1088  }
  0x37   :  { %989 = vsyncadd [#allocation8], 4294966208  ;;  %v98_v0 = vld [vmem:[#allocation4 + $0x80] sm:$0xff]  ;;  %v114_v1 = vld [vmem:[#allocation4 + $0x88] sm:$0xff]  ;;  %vm578_vm0 = vcmask 523264   ;;  %vm1000_vm1 = vmmov 0  }
  0x38   :  { %v90_v2 = vld [vmem:[#allocation4] sm:$0xff]  ;;  %v146_v3 = vadd.f32 %v114_v1, %v98_v0  ;;  %v106_v4 = vld [vmem:[#allocation4 + $0x8] sm:$0xff]  ;;  %v99_v5 = vld [vmem:[#allocation4 + $0x90] sm:$0xff]  ;;  %v210_v27 = vmax.f32 %v98_v0, %v114_v1  ;;  %v999_v0 = vmov 0.0   ;;  %vm664_vm2 = vcmask 31744   ;;  %s1003_s2 = smov [#allocation10]  }
  0x39   :  { %v115_v6 = vld [vmem:[#allocation4 + $0x98] sm:$0xff]  ;;  %v138_v7 = vadd.f32 %v106_v4, %v90_v2  ;;  %v91_v8 = vld [vmem:[#allocation4 + $0x10] sm:$0xff]  ;;  %v100_v12 = vld [vmem:[#allocation4 + $0xa0] sm:$0xff]  ;;  %v202_v25 = vmax.f32 %v90_v2, %v106_v4  ;;  %841 = vmatprep.subr.mxu0 %v999_v0  ;;  %843 = vmatprep.mubr.msk.f32.mxu0 %vm1000_vm1, %v999_v0  ;;  %v1001_v4 = vmov 0.0|0.0   ;;  %vm392_vm4 = vcmask 130112   ;;  %s805_s23 = sshll.u32 %s1003_s2, 4  ;;  %s806_s23 = int_to_ptr.vmem [resolvable:$true] %s805_s23 }
  0x3a   :  { %v107_v9 = vld [vmem:[#allocation4 + $0x18] sm:$0xff]  ;;  %285 = vadd.xlane.f32.xlu1 %v146_v3  ;;  %v147_v10 = vadd.f32 %v115_v6, %v99_v5  ;;  %v116_v13 = vld [vmem:[#allocation4 + $0xa8] sm:$0xff]  ;;  %v92_v14 = vld [vmem:[#allocation4 + $0x20] sm:$0xff]  ;;  %v211_v26 = vmax.f32 %v99_v5, %v115_v6  ;;  %862 = vmatprep.mubr.msk.f32.mxu1 %vm1000_vm1, %v999_v0  ;;  %vm399_vm5 = vcmask 195712   ;;  %vm406_vm6 = vcmask 261312   ;;  %s964_s24 = scalar_lea.vmem %s806_s23, 32  ;;  %p969_p11 = scmp.lt.s32.totalorder %s806_s23, %s806_s23 }
  0x3b   :  { %269 = vadd.xlane.f32.xlu0 %v138_v7  ;;  %v139_v11 = vadd.f32 %v107_v9, %v91_v8  ;;  %v108_v15 = vld [vmem:[#allocation4 + $0x28] sm:$0xff]  ;;  %v148_v16 = vadd.f32 %v116_v13, %v100_v12  ;;  %v101_v18 = vld [vmem:[#allocation4 + $0xb0] sm:$0xff]  ;;  %v117_v19 = vld [vmem:[#allocation4 + $0xb8] sm:$0xff]  ;;  %v203_v24 = vmax.f32 %v91_v8, %v107_v9  ;;  %v212_v34 = vmax.f32 %v100_v12, %v116_v13  ;;  %p965_p10 = scmp.ne.s32.totalorder %s806_s23, %s964_s24  ;;  %p970_p12 = scmp.lt.s32.totalorder %s964_s24, %s964_s24 }
  0x3c   :  { %v140_v17 = vadd.f32 %v108_v15, %v92_v14  ;;  %v93_v20 = vld [vmem:[#allocation4 + $0x30] sm:$0xff]  ;;  %v109_v21 = vld [vmem:[#allocation4 + $0x38] sm:$0xff]  ;;  %v149_v22 = vadd.f32 %v117_v19, %v101_v18  ;;  %v102_v28 = vld [vmem:[#allocation4 + $0xc0] sm:$0xff]  ;;  %v204_v35 = vmax.f32 %v92_v14, %v108_v15  ;;  %v213_v42 = vmax.f32 %v101_v18, %v117_v19  ;;  %865 = vmatprep.subr.bf16.mxu1 %v1001_v4 }
  0x3d   :  { %v141_v23 = vadd.f32 %v109_v21, %v93_v20  ;;  %v118_v29 = vld [vmem:[#allocation4 + $0xc8] sm:$0xff]  ;;  %v94_v30 = vld [vmem:[#allocation4 + $0x40] sm:$0xff]  ;;  %v103_v36 = vld [vmem:[#allocation4 + $0xd0] sm:$0xff]  ;;  %v205_v43 = vmax.f32 %v93_v20, %v109_v21  ;;  %vm413_vm7 = vcmask 326912   ;;  %vm420_vm8 = vcmask 392512   ;;  %p971_p13 = por %p970_p12, %p969_p11 }
  0x3e   :  { %287 = vadd.xlane.f32.xlu1 %v147_v10  ;;  %v110_v31 = vld [vmem:[#allocation4 + $0x48] sm:$0xff]  ;;  %v150_v32 = vadd.f32 %v118_v29, %v102_v28  ;;  %v119_v37 = vld [vmem:[#allocation4 + $0xd8] sm:$0xff]  ;;  %v95_v38 = vld [vmem:[#allocation4 + $0x50] sm:$0xff]  ;;  %v214_v50 = vmax.f32 %v102_v28, %v118_v29  ;;  %vm427_vm9 = vcmask 458112   ;;  %vm434_vm10 = vcmask 523712  }
  0x3f   :  { %271 = vadd.xlane.f32.xlu0 %v139_v11  ;;  %v142_v33 = vadd.f32 %v110_v31, %v94_v30  ;;  %v111_v39 = vld [vmem:[#allocation4 + $0x58] sm:$0xff]  ;;  %v151_v40 = vadd.f32 %v119_v37, %v103_v36  ;;  %v104_v44 = vld [vmem:[#allocation4 + $0xe0] sm:$0xff]  ;;  %v120_v45 = vld [vmem:[#allocation4 + $0xe8] sm:$0xff]  ;;  %v206_v51 = vmax.f32 %v94_v30, %v110_v31  ;;  %v215_v58 = vmax.f32 %v103_v36, %v119_v37  ;;  %p972_p0 = pnand %p971_p13, %p965_p10 }
  0x40   :  { %v143_v41 = vadd.f32 %v111_v39, %v95_v38  ;;  %v96_v46 = vld [vmem:[#allocation4 + $0x60] sm:$0xff]  ;;  %v112_v47 = vld [vmem:[#allocation4 + $0x68] sm:$0xff]  ;;  %v152_v48 = vadd.f32 %v120_v45, %v104_v44  ;;  %v105_v52 = vld [vmem:[#allocation4 + $0xf0] sm:$0xff]  ;;  %v207_v59 = vmax.f32 %v95_v38, %v111_v39  ;;  %v216_v60 = vmax.f32 %v104_v44, %v120_v45 }
  0x41   :  { %v144_v49 = vadd.f32 %v112_v47, %v96_v46  ;;  %v121_v53 = vld [vmem:[#allocation4 + $0xf8] sm:$0xff]  ;;  %v97_v54 = vld [vmem:[#allocation4 + $0x70] sm:$0xff]  ;;  %v208_v61 = vmax.f32 %v96_v46, %v112_v47  ;;  %v577_v1 = vld [vmem:[#allocation7] sm:$0xf]  ;;  %vm475_vm11 = vcmask 1041409   ;;  %vm572_vm12 = vcmask 1043459  }
  0x42   :  { %289 = vadd.xlane.f32.xlu1 %v148_v16  ;;  %v113_v55 = vld [vmem:[#allocation4 + $0x78] sm:$0xff]  ;;  %v153_v56 = vadd.f32 %v121_v53, %v105_v52  ;;  %v217_v62 = vmax.f32 %v105_v52, %v121_v53  ;;  %842 = vmatpush3.xpose.msk.msra.mxu0 %vm578_vm0, %v577_v1  ;;  %v656_v2 = vld [vmem:[#allocation9] sm:$0xff]  ;;  %v657_v3 = vld [vmem:[#allocation9 + $0x8] sm:$0xff]  ;;  %vm575_vm13 = vcmask 1041408   ;;  %vm797_vm14 = vcmask 516096  }
  0x43   :  { %273 = vadd.xlane.f32.xlu0 %v140_v17  ;;  %v145_v57 = vadd.f32 %v113_v55, %v97_v54  ;;  %v209_v63 = vmax.f32 %v97_v54, %v113_v55  ;;  %v866_v5 = vpack.c.bf16 %v657_v3, %v656_v2  ;;  %vm1072_vm3 = vmpackc.low %vm664_vm2, %vm664_vm2  ;;  %v658_v7 = vld [vmem:[#allocation9 + $0x10] sm:$0xff]  ;;  %v659_v8 = vld [vmem:[#allocation9 + $0x18] sm:$0xff] }
  0x44   :  { %v870_v9 = vpack.c.bf16 %v659_v8, %v658_v7  ;;  %v660_v10 = vld [vmem:[#allocation9 + $0x20] sm:$0xff]  ;;  %v661_v11 = vld [vmem:[#allocation9 + $0x28] sm:$0xff]  ;;  %v662_v13 = vld [vmem:[#allocation9 + $0x30] sm:$0xff] }
  0x45   :  { %868 = vmatpush3.bf16.xpose.msk.msra.mxu1 %vm1072_vm3, %v866_v5  ;;  %v874_v12 = vpack.c.bf16 %v661_v11, %v660_v10  ;;  %v663_v14 = vld [vmem:[#allocation9 + $0x38] sm:$0xff] }
  0x46   :  { %291 = vadd.xlane.f32.xlu1 %v149_v22  ;;  %869 = vmatprep.subr.bf16.mxu1 %v1001_v4  ;;  %v878_v15 = vpack.c.bf16 %v663_v14, %v662_v13 }
  0x47   :  { %275 = vadd.xlane.f32.xlu0 %v141_v23 }
  0x4a   :  { %335 = vmax.xlane.f32.xlu1 %v203_v24 }
  0x4b   :  { %333 = vmax.xlane.f32.xlu0 %v202_v25 }
  0x4d   :  { %872 = vmatpush3.bf16.xpose.msk.msra.mxu1 %vm1072_vm3, %v870_v9 }
  0x4e   :  { %351 = vmax.xlane.f32.xlu1 %v211_v26  ;;  %873 = vmatprep.subr.bf16.mxu1 %v1001_v4 }
  0x4f   :  { %349 = vmax.xlane.f32.xlu0 %v210_v27 }
  0x52   :  { %293 = vadd.xlane.f32.xlu1 %v150_v32  ;;  %v381_v32 = vlaneseq }
  0x53   :  { %277 = vadd.xlane.f32.xlu0 %v142_v33 }
  0x54   :  { %v1096_v36 = vshrl.u32 %v381_v32, 7 }
  0x55   :  { %876 = vmatpush3.bf16.xpose.msk.msra.mxu1 %vm1072_vm3, %v874_v12 }
  0x56   :  { %353 = vmax.xlane.f32.xlu1 %v212_v34  ;;  %877 = vmatprep.subr.bf16.mxu1 %v1001_v4 }
  0x57   :  { %337 = vmax.xlane.f32.xlu0 %v204_v35  ;;  %v382_v35 = vand.u32 127, %v381_v32 }
  0x59   :  { %v387_v38 = vadd.s32 4294967288, %v382_v35  ;;  %v394_v39 = vadd.s32 4294967280, %v382_v35  ;;  %v422_v54 = vadd.s32 4294967248, %v382_v35 }
  0x5a   :  { %295 = vadd.xlane.f32.xlu1 %v151_v40 }
  0x5b   :  { %279 = vadd.xlane.f32.xlu0 %v143_v41  ;;  %v401_v41 = vadd.s32 4294967272, %v382_v35  ;;  %v1106_v44 = vsub.s32 %v387_v38, %v1096_v36  ;;  %v1109_v46 = vsub.s32 %v394_v39, %v1096_v36  ;;  %v1129_v6 = vsub.s32 %v422_v54, %v1096_v36 }
  0x5d   :  { %880 = vmatpush3.bf16.xpose.msk.msra.mxu1 %vm1072_vm3, %v878_v15  ;;  %v1112_v53 = vsub.s32 %v401_v41, %v1096_v36 }
  0x5e   :  { %355 = vmax.xlane.f32.xlu1 %v213_v42  ;;  %v1103_v42 = vsub.s32 %v382_v35, %v1096_v36 }
  0x5f   :  { %339 = vmax.xlane.f32.xlu0 %v205_v43 }
  0x62   :  { %297 = vadd.xlane.f32.xlu1 %v152_v48 }
  0x63   :  { %281 = vadd.xlane.f32.xlu0 %v144_v49  ;;  %v408_v49 = vadd.s32 4294967264, %v382_v35 }
  0x65   :  { %v1121_v0 = vsub.s32 %v408_v49, %v1096_v36 }
  0x66   :  { %357 = vmax.xlane.f32.xlu1 %v214_v50  ;;  %v415_v50 = vadd.s32 4294967256, %v382_v35 }
  0x67   :  { %341 = vmax.xlane.f32.xlu0 %v206_v51 }
  0x68   :  { %v1124_v2 = vsub.s32 %v415_v50, %v1096_v36 }
  0x6a   :  { %299 = vadd.xlane.f32.xlu1 %v153_v56 }
  0x6b   :  { %283 = vadd.xlane.f32.xlu0 %v145_v57 }
  0x6e   :  { %359 = vmax.xlane.f32.xlu1 %v215_v58 }
  0x6f   :  { %343 = vmax.xlane.f32.xlu0 %v207_v59  ;;  %v429_v59 = vadd.s32 4294967240, %v382_v35 }
  0x71   :  { %v1135_v10 = vsub.s32 %v429_v59, %v1096_v36 }
  0x72   :  { %361 = vmax.xlane.f32.xlu1 %v216_v60 }
  0x73   :  { %345 = vmax.xlane.f32.xlu0 %v208_v61 }
  0x76   :  { %363 = vmax.xlane.f32.xlu1 %v217_v62 }
  0x77   :  { %347 = vmax.xlane.f32.xlu0 %v209_v63 }
  0xc7   :  { %v286_v16 = vpop.xlane.xlu1 %285 }
  0xc8   :  { %v270_v17 = vpop.xlane.xlu0 %269  ;;  %v309_v51 = vmul.f32 0.00390625, %v286_v16 }
  0xc9   :  { %v301_v55 = vmul.f32 0.00390625, %v270_v17 }
  0xca   :  { %v439_v3 = vrot.slane %v309_v51, %v1103_v42 }
  0xcb   :  { %v288_v18 = vpop.xlane.xlu1 %287  ;;  %v386_v7 = vrot.slane %v301_v55, %v1103_v42 }
  0xcc   :  { %v272_v19 = vpop.xlane.xlu0 %271  ;;  %v310_v45 = vmul.f32 0.00390625, %v288_v18 }
  0xcd   :  { %v302_v48 = vmul.f32 0.00390625, %v272_v19 }
  0xce   :  { %v443_v60 = vrot.slane %v310_v45, %v1106_v44 }
  0xcf   :  { %v290_v20 = vpop.xlane.xlu1 %289  ;;  %v391_v63 = vrot.slane %v302_v48, %v1106_v44 }
  0xd0   :  { %v274_v21 = vpop.xlane.xlu0 %273  ;;  %v311_v52 = vmul.f32 0.00390625, %v290_v20  ;;  %v444_v12 = vsel %vm392_vm4, %v443_v60, %v439_v3 }
  0xd1   :  { %v303_v56 = vmul.f32 0.00390625, %v274_v21  ;;  %v393_v17 = vsel %vm392_vm4, %v391_v63, %v386_v7 }
  0xd2   :  { %v448_v4 = vrot.slane %v311_v52, %v1109_v46 }
  0xd3   :  { %v292_v22 = vpop.xlane.xlu1 %291  ;;  %v398_v8 = vrot.slane %v303_v56, %v1109_v46 }
  0xd4   :  { %v276_v23 = vpop.xlane.xlu0 %275  ;;  %v312_v57 = vmul.f32 0.00390625, %v292_v22  ;;  %v449_v21 = vsel %vm399_vm5, %v448_v4, %v444_v12 }
  0xd5   :  { %v304_v61 = vmul.f32 0.00390625, %v276_v23 }
  0xd6   :  { %v453_v9 = vrot.slane %v312_v57, %v1112_v53 }
  0xd7   :  { %v1084_v24 = vpop.xlane.xlu1 %335  ;;  %v405_v13 = vrot.slane %v304_v61, %v1112_v53 }
  0xd8   :  { %v1086_v25 = vpop.xlane.xlu0 %333  ;;  %v501_v14 = vrot.slane %v1084_v24, %v1106_v44 }
  0xd9   :  { %v497_v15 = vrot.slane %v1086_v25, %v1103_v42  ;;  %v400_v25 = vsel %vm399_vm5, %v398_v8, %v393_v17 }
  0xdb   :  { %v1088_v26 = vpop.xlane.xlu1 %351 }
  0xdc   :  { %v1090_v27 = vpop.xlane.xlu0 %349  ;;  %v540_v18 = vrot.slane %v1088_v26, %v1106_v44  ;;  %v407_v26 = vsel %vm406_vm6, %v405_v13, %v400_v25 }
  0xdd   :  { %v536_v19 = vrot.slane %v1090_v27, %v1103_v42  ;;  %v502_v27 = vsel %vm392_vm4, %v501_v14, %v497_v15 }
  0xdf   :  { %v294_v28 = vpop.xlane.xlu1 %293  ;;  %v541_v42 = vsel %vm392_vm4, %v540_v18, %v536_v19 }
  0xe0   :  { %v278_v29 = vpop.xlane.xlu0 %277  ;;  %v313_v1 = vmul.f32 0.00390625, %v294_v28  ;;  %v454_v28 = vsel %vm406_vm6, %v453_v9, %v449_v21 }
  0xe1   :  { %v305_v5 = vmul.f32 0.00390625, %v278_v29 }
  0xe2   :  { %v458_v20 = vrot.slane %v313_v1, %v1121_v0 }
  0xe3   :  { %v1092_v30 = vpop.xlane.xlu1 %353  ;;  %v412_v22 = vrot.slane %v305_v5, %v1121_v0 }
  0xe4   :  { %v1094_v31 = vpop.xlane.xlu0 %337  ;;  %v545_v38 = vrot.slane %v1092_v30, %v1109_v46 }
  0xe6   :  { %v546_v51 = vsel %vm399_vm5, %v545_v38, %v541_v42 }
  0xe7   :  { %v296_v33 = vpop.xlane.xlu1 %295 }
  0xe8   :  { %v280_v34 = vpop.xlane.xlu0 %279  ;;  %v314_v23 = vmul.f32 0.00390625, %v296_v33  ;;  %v459_v33 = vsel %vm413_vm7, %v458_v20, %v454_v28 }
  0xe9   :  { %v306_v24 = vmul.f32 0.00390625, %v280_v34  ;;  %v506_v34 = vrot.slane %v1094_v31, %v1109_v46 }
  0xea   :  { %v463_v45 = vrot.slane %v314_v23, %v1124_v2 }
  0xeb   :  { %v1098_v37 = vpop.xlane.xlu1 %355 }
  0xec   :  { %v1100_v40 = vpop.xlane.xlu0 %339  ;;  %v550_v30 = vrot.slane %v1098_v37, %v1112_v53 }
  0xed   :  { %v511_v48 = vrot.slane %v1100_v40, %v1112_v53  ;;  %v507_v40 = vsel %vm399_vm5, %v506_v34, %v502_v27 }
  0xee   :  { %v551_v60 = vsel %vm406_vm6, %v550_v30, %v546_v51 }
  0xef   :  { %v298_v43 = vpop.xlane.xlu1 %297 }
  0xf0   :  { %v282_v47 = vpop.xlane.xlu0 %281  ;;  %v315_v29 = vmul.f32 0.00390625, %v298_v43  ;;  %v414_v43 = vsel %vm413_vm7, %v412_v22, %v407_v26 }
  0xf1   :  { %v307_v32 = vmul.f32 0.00390625, %v282_v47  ;;  %v419_v47 = vrot.slane %v306_v24, %v1124_v2 }
  0xf2   :  { %v468_v49 = vrot.slane %v315_v29, %v1129_v6 }
  0xf3   :  { %v1114_v58 = vpop.xlane.xlu1 %357  ;;  %v426_v50 = vrot.slane %v307_v32, %v1129_v6  ;;  %v421_v59 = vsel %vm420_vm8, %v419_v47, %v414_v43  ;;  %v1002_v32 = vmov 1966171168  }
  0xf4   :  { %v1117_v62 = vpop.xlane.xlu0 %341  ;;  %v555_v31 = vrot.slane %v1114_v58, %v1121_v0  ;;  %v464_v58 = vsel %vm420_vm8, %v463_v45, %v459_v33 }
  0xf5   :  { %v516_v52 = vrot.slane %v1117_v62, %v1121_v0  ;;  %v512_v62 = vsel %vm406_vm6, %v511_v48, %v507_v40  ;;  %v469_v63 = vsel %vm427_vm9, %v468_v49, %v464_v58  ;;  %v428_v0 = vsel %vm427_vm9, %v426_v50, %v421_v59 }
  0xf6   :  { %v556_v1 = vsel %vm413_vm7, %v555_v31, %v551_v60 }
  0xf7   :  { %v300_v11 = vpop.xlane.xlu1 %299 }
  0xf8   :  { %v284_v16 = vpop.xlane.xlu0 %283  ;;  %v316_v39 = vmul.f32 0.00390625, %v300_v11 }
  0xf9   :  { %v308_v44 = vmul.f32 0.00390625, %v284_v16 }
  0xfa   :  { %v473_v54 = vrot.slane %v316_v39, %v1135_v10 }
  0xfb   :  { %v360_v35 = vpop.xlane.xlu1 %359  ;;  %v433_v53 = vrot.slane %v308_v44, %v1135_v10 }
  0xfc   :  { %v344_v41 = vpop.xlane.xlu0 %343  ;;  %v560_v37 = vrot.slane %v360_v35, %v1124_v2  ;;  %v474_v4 = vsel %vm434_vm10, %v473_v54, %v469_v63  ;;  %v774_v35 = vunpack.c.l.s4 %v1002_v32 }
  0xfd   :  { %v521_v56 = vrot.slane %v344_v41, %v1124_v2  ;;  %v517_v2 = vsel %vm413_vm7, %v516_v52, %v512_v62 }
  0xfe   :  { %v561_v5 = vsel %vm420_vm8, %v560_v37, %v556_v1  ;;  %v775_v26 = vunpack.c.0.s8 %v774_v35 }
  0xff   :  { %v362_v46 = vpop.xlane.xlu1 %361  ;;  %v522_v9 = vsel %vm420_vm8, %v521_v56, %v517_v2 }
 0x100   :  { %v346_v55 = vpop.xlane.xlu0 %345  ;;  %v565_v57 = vrot.slane %v362_v46, %v1129_v6  ;;  %v778_v27 = vsub.s32 %v775_v26, %v1096_v36 }
 0x101   :  { %v526_v61 = vrot.slane %v346_v55, %v1129_v6  ;;  %v435_v6 = vsel %vm434_vm10, %v433_v53, %v428_v0 }
 0x102   :  { %v566_v11 = vsel %vm427_vm9, %v565_v57, %v561_v5  ;;  %v476_v16 = vsel %vm475_vm11, %v474_v4, %v435_v6 }
 0x103   :  { %v364_v3 = vpop.xlane.xlu1 %363  ;;  %v527_v13 = vsel %vm427_vm9, %v526_v61, %v522_v9 }
 0x104   :  { %v570_v7 = vrot.slane %v364_v3, %v1135_v10  ;;  %v348_v8 = vpop.xlane.xlu0 %347 }
 0x105   :  { %v531_v12 = vrot.slane %v348_v8, %v1135_v10 }
 0x106   :  { %v571_v14 = vsel %vm434_vm10, %v570_v7, %v566_v11 }
 0x107   :  { %v532_v15 = vsel %vm434_vm10, %v531_v12, %v527_v13 }
 0x108   :  { %v573_v17 = vsel %vm572_vm12, %v571_v14, %v532_v15 }
 0x109   :  { %v576_v18 = vsel %vm575_vm13, %v476_v16, %v573_v17 }
 0x10a   :  { %844 = vmatmul.mubr.msk.f32.vlgmr.msra.gmra.mrb[0].mxu0 %vm578_vm0, %v576_v18 }
 0x1dd   :  { %v651_v19 = vpop.f32.mrb[0].mxu0 }
 0x1de   :  { %v655_v20 = vmax.f32 %v651_v19, 0.0  ;;  %v845_v21 = vpop.f32.mrb[1].mxu0 }
 0x1e0   :  { %863 = vmatmul.mubr.msk.f32.vlgmr.msra.gmra.mrb[0].mxu1 %vm664_vm2, %v655_v20 }
 0x2b3   :  { %v758_v10 = vpop.f32.mrb[0].mxu1 }
 0x2b4   :  { %v763_v22 = vrot.slane %v758_v10, 2  ;;  %v864_v23 = vpop.f32.mrb[1].mxu1 }
 0x2b6   :  { %v765_v24 = vadd.f32 %v763_v22, %v758_v10 }
 0x2b8   :  { %v829_v25 = vmul.f32 -1.442695, %v765_v24 }
 0x2ba   :  { %894 = vpow2.f32 %v829_v25 }
 0x2c4   :  { %v895_v28 = vpop.eup %894 }
 0x2c5   :  { %v769_v29 = vadd.f32 1.0, %v895_v28 }
 0x2c7   :  { %896 = vrcp.f32 %v769_v29 }
 0x2d1   :  { %v897_v38 = vpop.eup %896 }
 0x2d2   :  { %v779_v39 = vrot.slane %v897_v38, %v778_v27 }
 0x2d4   :  { %v780_v41 = vcombine.high %v779_v39, %v779_v39  ;;  %v787_v42 = vrot.slane %v779_v39, %v778_v27 }
 0x2d6   :  { %v794_v33 = vrot.slane %v780_v41, %v778_v27  ;;  %798 = vst.msk [vmem:[#allocation10] sm:$0x1] %vm797_vm14, %v787_v42 }
 0x2d8   :  { %799 = vst.msk [vmem:[#allocation10 + $0x1] sm:$0x1] %vm797_vm14, %v794_v33 }
 0x2d9   :  { %975 = shalt.err (!%p972_p0)
}
 0x2da   :  { %s976_s27 = scalar_lea.hbm %s1222_s3, 32 }
 0x2db   :  { %p977_p1 = scmp.ne.s32.totalorder %s1222_s3, %s976_s27  ;;  %p980_p2 = scmp.lt.u32.totalorder %s976_s27, %s1222_s3 }
 0x2dd   :  { %p982_p3 = pnand %p980_p2, %p977_p1 }
 0x2df   :  { %985 = shalt.err (!%p982_p3)
}
 0x2e0   :  { %s1004_s5 = smov 1  }
 0x2e1   :  { %811 = dma.vmem_to_hbm [thread:$0]  %s806_s23, 32, %s1222_s3, [#allocation6], %s995_s7, %s995_s7, %s1004_s5  }
 0x2e2   :  { %990 = dma.done.wait [#allocation6], 32  }
 0x2e3   :  { %991 = vsyncadd [#allocation6], 4294967264 }
 0x2e4   :  { %815 = vsyncpa [#allocation5], 1 }
 0x2e5   :  { %816 = vsyncpa [#allocation8], 1 }
 0x2e6   :  { %817 = vsyncpa [#allocation6], 1 }

</bundles_post_ra>
